<compile_context>
chip_gen: v7x
topology: tpu7x:2x2x1
jax: 0.10.0
libtpu: 0.0.40
codegen_flags: <defaults>
</compile_context>

<pallas_src>
import math

import jax
import jax.numpy as jnp
from jax.experimental import pallas as pl
from jax.experimental.pallas import tpu as pltpu


# --------------------------------------------------------------------------- #
# Kernel
# --------------------------------------------------------------------------- #
def _mlp_kernel(x_ref, wg_ref, wu_ref, wd_ref, o_ref, acc_ref):
    # x_ref : (tm, H)   bf16 token tile (resident across the k loop)
    # wg_ref: (H, ti)   gate weight chunk (chunk axis squeezed away)
    # wu_ref: (H, ti)   up weight chunk
    # wd_ref: (ti, H)   down weight chunk
    # o_ref : (tm, H)   output tile
    # acc_ref: (tm, H)  f32 accumulator (VMEM scratch)
    k = pl.program_id(1)

    @pl.when(k == 0)
    def _init():
        acc_ref[...] = jnp.zeros_like(acc_ref)

    x = x_ref[...]
    # Two separate dots (gate / up) -> no (tm, 2I) intermediate, no slicing copies.
    gate = jnp.dot(x, wg_ref[...], preferred_element_type=jnp.float32)
    up = jnp.dot(x, wu_ref[...], preferred_element_type=jnp.float32)

    # SiluAndMul in f32 on the VPU/EUP; cast only the MXU operand to bf16.
    act = (gate * jax.nn.sigmoid(gate)) * up

    acc_ref[...] += jnp.dot(act.astype(wd_ref.dtype), wd_ref[...],
                            preferred_element_type=jnp.float32)

    @pl.when(k == pl.num_programs(1) - 1)
    def _finalize():
        o_ref[...] = acc_ref[...].astype(o_ref.dtype)


# --------------------------------------------------------------------------- #
# Helpers
# --------------------------------------------------------------------------- #
def _round_up(x, m):
    return ((x + m - 1) // m) * m


def _tpu_vmem_bytes():
    """Physical VMEM capacity; conservative 64 MiB (v7x) fallback."""
    try:
        info = pltpu.get_tpu_info()
        cap = getattr(info, "vmem_capacity_bytes", None)
        if cap:
            return int(cap)
    except Exception:
        pass
    return 64 << 20


def _default_i_chunk(intermediate, vmem_cap):
    # 128 MiB-class chips (v5e/v6e): longer k chunks halve the k-step count and
    # lengthen DMA bursts.  64 MiB-class (v7x): smaller chunks so tm can stay big.
    pref = 512 if vmem_cap >= (100 << 20) else 256
    return min(pref, _round_up(intermediate, 128))


def _vmem_estimate(tm, ti, hidden, bpe):
    """Real buffer sum for one (tm, ti) tile configuration."""
    return (2 * tm * hidden * bpe            # x tiles (double-buffered)
            + 2 * 2 * hidden * ti * bpe      # gate + up weight chunks
            + 2 * ti * hidden * bpe          # down weight chunks
            + tm * hidden * 4                # f32 accumulator scratch
            + 2 * tm * hidden * bpe)         # output tiles


def _select_token_tile(tokens, hidden, ti, vmem_cap, bpe):
    """Largest token tile that fits ~85% of VMEM (arithmetic intensity ~ tm)."""
    budget = int(vmem_cap * 0.85)
    margin = 2 << 20                         # Mosaic internal scratch headroom
    limit = _round_up(max(tokens, 1), 16)
    if vmem_cap >= (100 << 20):              # v5e / v6e (128 MiB VMEM)
        cands = (1024, 768, 512, 384, 256, 192, 128, 64, 32, 16)
    else:                                    # v7x (64 MiB VMEM)
        cands = (512, 384, 256, 192, 128, 64, 32, 16)
    for tm in cands:
        if tm > limit:
            continue
        if _vmem_estimate(tm, ti, hidden, bpe) + margin <= budget:
            return tm
    return 16


# --------------------------------------------------------------------------- #
# One-time weight preparation (hoisted out of the per-call path)
# --------------------------------------------------------------------------- #
def prepare_mlp_weights(w_gate_up, w_down, *, i_chunk=None,
                        compute_dtype=jnp.bfloat16):
    """Cast/split/pad/re-layout the MLP weights once, at load time.

    w_gate_up: (H, 2I) merged [gate | up] (MergedColumnParallelLinear order).
    w_down   : (I, H).
    Returns a dict holding chunk-major bf16 weights plus layout metadata.
    """
    hidden, two_i = w_gate_up.shape
    intermediate = two_i // 2
    assert w_gate_up.shape == (hidden, two_i)
    assert w_down.shape == (intermediate, hidden)

    vmem_cap = _tpu_vmem_bytes()
    ti = i_chunk if i_chunk is not None else _default_i_chunk(intermediate, vmem_cap)
    ti = _round_up(ti, 128)
    i_pad = _round_up(intermediate, ti)

    wg = w_gate_up[:, :intermediate].astype(compute_dtype)
    wu = w_gate_up[:, intermediate:].astype(compute_dtype)
    wd = w_down.astype(compute_dtype)
    if i_pad != intermediate:
        # Zero gate columns -> silu(0)=0 -> act=0; zero down rows -> contribute 0.
        pad = i_pad - intermediate
        wg = jnp.pad(wg, ((0, 0), (0, pad)))
        wu = jnp.pad(wu, ((0, 0), (0, pad)))
        wd = jnp.pad(wd, ((0, pad), (0, 0)))

    k = i_pad // ti
    # Chunk-major layouts: every streamed tile is one contiguous HBM slab.
    wg = wg.reshape(hidden, k, ti).transpose(1, 0, 2)   # (K, H, ti)
    wu = wu.reshape(hidden, k, ti).transpose(1, 0, 2)   # (K, H, ti)
    wd = wd.reshape(k, ti, hidden)                      # (K, ti, H)

    return dict(wg=wg, wu=wu, wd=wd,
                hidden=hidden, intermediate=intermediate,
                i_pad=i_pad, ti=ti, n_chunks=k,
                compute_dtype=compute_dtype)


# --------------------------------------------------------------------------- #
# Forward
# --------------------------------------------------------------------------- #
def deepseek_v2_mlp(x, weights, *, token_tile=None):
    """x: (..., H). `weights` is the dict from prepare_mlp_weights."""
    hidden = weights["hidden"]
    ti = weights["ti"]
    i_pad = weights["i_pad"]
    n_chunks = weights["n_chunks"]
    cdt = weights["compute_dtype"]
    wg, wu, wd = weights["wg"], weights["wu"], weights["wd"]

    orig_shape = x.shape
    assert orig_shape[-1] == hidden
    tokens = int(math.prod(orig_shape[:-1]))
    out_dtype = x.dtype
    bpe = jnp.dtype(cdt).itemsize

    x2d = x.reshape(tokens, hidden).astype(cdt)

    vmem_cap = _tpu_vmem_bytes()
    tm = token_tile if token_tile is not None else _select_token_tile(
        tokens, hidden, ti, vmem_cap, bpe)
    tm = max(16, _round_up(tm, 16))
    t_pad = _round_up(tokens, tm)

    # Megacore (v7x has 2 TensorCores): if the "parallel" axis collapsed to a
    # single tile, halve it so both cores get work.  Harmless on 1-TC chips.
    if t_pad // tm == 1 and vmem_cap <= (72 << 20) and tm >= 32:
        tm //= 2
        t_pad = _round_up(tokens, tm)

    if t_pad != tokens:
        x2d = jnp.pad(x2d, ((0, t_pad - tokens), (0, 0)))

    n_t_tiles = t_pad // tm
    grid = (n_t_tiles, n_chunks)

    # VMEM limit: real buffer sum + margin, capped at 90% of physical VMEM.
    vmem_limit = _vmem_estimate(tm, ti, hidden, bpe) + (4 << 20)
    vmem_limit = max(vmem_limit, 32 << 20)
    vmem_limit = min(vmem_limit, int(vmem_cap * 0.9))

    flops = 6 * t_pad * hidden * i_pad                     # gate + up + down matmuls
    w_bytes = (wg.size + wu.size + wd.size) * bpe
    bytes_accessed = (2 * t_pad * hidden * bpe             # activations in + out
                      + w_bytes * n_t_tiles)               # weights re-streamed per token tile
    cost = pl.CostEstimate(flops=flops,
                           transcendentals=t_pad * i_pad,
                           bytes_accessed=bytes_accessed)

    out2d = pl.pallas_call(
        _mlp_kernel,
        out_shape=jax.ShapeDtypeStruct((t_pad, hidden), out_dtype),
        grid_spec=pltpu.PrefetchScalarGridSpec(
            num_scalar_prefetch=0,
            grid=grid,
            in_specs=[
                pl.BlockSpec((tm, hidden), lambda i, k: (i, 0)),        # x tile (resident over k)
                pl.BlockSpec((None, hidden, ti), lambda i, k: (k, 0, 0)),  # gate chunk (contiguous)
                pl.BlockSpec((None, hidden, ti), lambda i, k: (k, 0, 0)),  # up chunk   (contiguous)
                pl.BlockSpec((None, ti, hidden), lambda i, k: (k, 0, 0)),  # down chunk (contiguous)
            ],
            out_specs=pl.BlockSpec((tm, hidden), lambda i, k: (i, 0)),
            scratch_shapes=[pltpu.VMEM((tm, hidden), jnp.float32)],
        ),
        compiler_params=pltpu.CompilerParams(
            dimension_semantics=("parallel", "arbitrary"),
            vmem_limit_bytes=int(vmem_limit)),
        cost_estimate=cost,
    )(x2d, wg, wu, wd)

    return out2d[:tokens].reshape(orig_shape)


# --------------------------------------------------------------------------- #
# Pure-JAX reference (mirrors the PyTorch unquantized forward)
# --------------------------------------------------------------------------- #
def reference_mlp(x, w_gate_up, w_down, compute_dtype=jnp.bfloat16):
    intermediate = w_down.shape[0]
    xc = x.astype(compute_dtype)
    wgu = w_gate_up.astype(compute_dtype)
    wd = w_down.astype(compute_dtype)
    gate_up = jnp.einsum("...h,hi->...i", xc, wgu,
                         preferred_element_type=jnp.float32)
    gate, up = gate_up[..., :intermediate], gate_up[..., intermediate:]
    act = (jax.nn.silu(gate) * up).astype(compute_dtype)
    out = jnp.einsum("...i,ih->...h", act, wd,
                     preferred_element_type=jnp.float32)
    return out.astype(x.dtype)


# --------------------------------------------------------------------------- #
# Self-test
# --------------------------------------------------------------------------- #
if __name__ == "__main__":
    hidden_act = "silu"
    assert hidden_act == "silu"  # module only supports silu

    key = jax.random.PRNGKey(0)
    kx, kgu, kdn, kx2, kgu2, kdn2, kx3 = jax.random.split(key, 7)

    # ---- Case 1 & 2: H=128, I=256 (tile-friendly intermediate) -------------
    hidden_size, intermediate_size = 128, 256
    w_gate_up = (jax.random.normal(
        kgu, (hidden_size, 2 * intermediate_size), dtype=jnp.float32) * 0.05)
    w_down = (jax.random.normal(
        kdn, (intermediate_size, hidden_size), dtype=jnp.float32) * 0.05)
    params = prepare_mlp_weights(w_gate_up, w_down)   # one-time weight prep

    # Case 1: batch=2, seq=8 -> 16 tokens.
    x = jax.random.normal(kx, (2, 8, hidden_size), dtype=jnp.float32)
    out = jax.block_until_ready(deepseek_v2_mlp(x, params))
    ref = reference_mlp(x, w_gate_up, w_down)
    assert out.shape == x.shape
    assert jnp.allclose(out, ref, atol=2e-2, rtol=2e-2), (
        f"mismatch: {jnp.max(jnp.abs(out - ref))}")

    # Case 2: ragged token count (batch=1, seq=5) -> exercises token padding.
    x2 = jax.random.normal(kx2, (1, 5, hidden_size), dtype=jnp.float32)
    out2 = jax.block_until_ready(deepseek_v2_mlp(x2, params))
    ref2 = reference_mlp(x2, w_gate_up, w_down)
    assert out2.shape == x2.shape
    assert jnp.allclose(out2, ref2, atol=2e-2, rtol=2e-2), (
        f"mismatch (ragged): {jnp.max(jnp.abs(out2 - ref2))}")

    # ---- Case 3: I=320 with i_chunk=128 -> intermediate padding, multi-k,
    #              multiple token tiles (48 tokens). ------------------------
    intermediate3 = 320
    w_gate_up3 = (jax.random.normal(
        kgu2, (hidden_size, 2 * intermediate3), dtype=jnp.float32) * 0.05)
    w_down3 = (jax.random.normal(
        kdn2, (intermediate3, hidden_size), dtype=jnp.float32) * 0.05)
    params3 = prepare_mlp_weights(w_gate_up3, w_down3, i_chunk=128)
    x3 = jax.random.normal(kx3, (2, 24, hidden_size), dtype=jnp.float32)
    out3 = jax.block_until_ready(deepseek_v2_mlp(x3, params3, token_tile=32))
    ref3 = reference_mlp(x3, w_gate_up3, w_down3)
    assert out3.shape == x3.shape
    assert jnp.allclose(out3, ref3, atol=2e-2, rtol=2e-2), (
        f"mismatch (padded I): {jnp.max(jnp.abs(out3 - ref3))}")

    # TODO(synk): quantized path (npu_dynamic_quant / npu_quant_matmul /
    # npu_dequant_swiglu_quant) and tensor-parallel all-reduce are not modeled
    # (tp_size == 1, unquantized).
    print("KERNEL_OK")
</pallas_src>

<mosaic_0001>
module attributes {stable_mosaic.version = 11 : i64} {
  func.func @_mlp_kernel(%arg0: i32, %arg1: i32, %arg2: memref<16x128xbf16, #tpu.memory_space<vmem>>, %arg3: memref<1x128x256xbf16, #tpu.memory_space<vmem>>, %arg4: memref<1x128x256xbf16, #tpu.memory_space<vmem>>, %arg5: memref<1x256x128xbf16, #tpu.memory_space<vmem>>, %arg6: memref<16x128xf32, #tpu.memory_space<vmem>>, %arg7: memref<16x128xf32, #tpu.memory_space<vmem>>) attributes {dimension_semantics = [#tpu.dimension_semantics<parallel>, #tpu.dimension_semantics<arbitrary>], iteration_bounds = array<i64: 1, 1>, scalar_prefetch = 0 : i64, scratch_operands = 1 : i64, tpu.core_type = #tpu.core_type<tc>, window_params = [{transform_indices = @transform_0, window_bounds = array<i64: 16, 128>}, {transform_indices = @transform_1, window_bounds = array<i64: 1, 128, 256>}, {transform_indices = @transform_2, window_bounds = array<i64: 1, 128, 256>}, {transform_indices = @transform_3, window_bounds = array<i64: 1, 256, 128>}, {transform_indices = @transform_4, window_bounds = array<i64: 16, 128>}]} {
    %c0_i32 = arith.constant 0 : i32
    %0 = arith.cmpi eq, %arg1, %c0_i32 : i32
    %1 = arith.extui %0 : i1 to i32
    %c0_i32_0 = arith.constant 0 : i32
    %2 = arith.cmpi ne, %1, %c0_i32_0 : i32
    scf.if %2 {
      %cst_20 = arith.constant 0.000000e+00 : f32
      %27 = vector.broadcast %cst_20 : f32 to vector<16x128xf32>
      %c0_21 = arith.constant 0 : index
      %c0_22 = arith.constant 0 : index
      %28 = vector.load %arg7[%c0_21, %c0_22] : memref<16x128xf32, #tpu.memory_space<vmem>>, vector<16x128xf32>
      tpu.vector_store %arg7[%c0_21, %c0_22], %27 {strides = array<i32>} : memref<16x128xf32, #tpu.memory_space<vmem>>, vector<16x128xf32>,
    } else {
    }
    %c0 = arith.constant 0 : index
    %c0_1 = arith.constant 0 : index
    %3 = vector.load %arg2[%c0, %c0_1] : memref<16x128xbf16, #tpu.memory_space<vmem>>, vector<16x128xbf16>
    %c0_2 = arith.constant 0 : index
    %c0_3 = arith.constant 0 : index
    %c0_4 = arith.constant 0 : index
    %4 = vector.load %arg3[%c0_2, %c0_3, %c0_4] : memref<1x128x256xbf16, #tpu.memory_space<vmem>>, vector<1x128x256xbf16>
    %5 = vector.shape_cast %4 : vector<1x128x256xbf16> to vector<128x256xbf16>
    %cst = arith.constant dense<0.000000e+00> : vector<16x256xf32>
    %6 = tpu.matmul %3, %5, %cst {dimension_numbers = #tpu.dot_dimension_numbers<[1], [0], [0], [1], [0, 0, 1, 1], [], []>} : vector<16x128xbf16>, vector<128x256xbf16>, vector<16x256xf32> -> vector<16x256xf32>
    %c0_5 = arith.constant 0 : index
    %c0_6 = arith.constant 0 : index
    %c0_7 = arith.constant 0 : index
    %7 = vector.load %arg4[%c0_5, %c0_6, %c0_7] : memref<1x128x256xbf16, #tpu.memory_space<vmem>>, vector<1x128x256xbf16>
    %8 = vector.shape_cast %7 : vector<1x128x256xbf16> to vector<128x256xbf16>
    %cst_8 = arith.constant dense<0.000000e+00> : vector<16x256xf32>
    %9 = tpu.matmul %3, %8, %cst_8 {dimension_numbers = #tpu.dot_dimension_numbers<[1], [0], [0], [1], [0, 0, 1, 1], [], []>} : vector<16x128xbf16>, vector<128x256xbf16>, vector<16x256xf32> -> vector<16x256xf32>
    %10 = arith.negf %6 : vector<16x256xf32>
    %11 = math.exp %10 : vector<16x256xf32>
    %cst_9 = arith.constant 1.000000e+00 : f32
    %12 = vector.broadcast %cst_9 : f32 to vector<16x256xf32>
    %13 = arith.addf %12, %11 : vector<16x256xf32>
    %14 = arith.divf %12, %13 : vector<16x256xf32>
    %15 = arith.mulf %6, %14 : vector<16x256xf32>
    %16 = arith.mulf %15, %9 : vector<16x256xf32>
    %c0_10 = arith.constant 0 : index
    %c0_11 = arith.constant 0 : index
    %17 = vector.load %arg7[%c0_10, %c0_11] : memref<16x128xf32, #tpu.memory_space<vmem>>, vector<16x128xf32>
    %18 = arith.truncf %16 : vector<16x256xf32> to vector<16x256xbf16>
    %c0_12 = arith.constant 0 : index
    %c0_13 = arith.constant 0 : index
    %c0_14 = arith.constant 0 : index
    %19 = vector.load %arg5[%c0_12, %c0_13, %c0_14] : memref<1x256x128xbf16, #tpu.memory_space<vmem>>, vector<1x256x128xbf16>
    %20 = vector.shape_cast %19 : vector<1x256x128xbf16> to vector<256x128xbf16>
    %cst_15 = arith.constant dense<0.000000e+00> : vector<16x128xf32>
    %21 = tpu.matmul %18, %20, %cst_15 {dimension_numbers = #tpu.dot_dimension_numbers<[1], [0], [0], [1], [0, 0, 1, 1], [], []>} : vector<16x256xbf16>, vector<256x128xbf16>, vector<16x128xf32> -> vector<16x128xf32>
    %22 = arith.addf %17, %21 : vector<16x128xf32>
    %c0_16 = arith.constant 0 : index
    %c0_17 = arith.constant 0 : index
    %23 = vector.load %arg7[%c0_16, %c0_17] : memref<16x128xf32, #tpu.memory_space<vmem>>, vector<16x128xf32>
    tpu.vector_store %arg7[%c0_16, %c0_17], %22 {strides = array<i32>} : memref<16x128xf32, #tpu.memory_space<vmem>>, vector<16x128xf32>,
    %c0_i32_18 = arith.constant 0 : i32
    %24 = arith.cmpi eq, %arg1, %c0_i32_18 : i32
    %25 = arith.extui %24 : i1 to i32
    %c0_i32_19 = arith.constant 0 : i32
    %26 = arith.cmpi ne, %25, %c0_i32_19 : i32
    scf.if %26 {
      %c0_20 = arith.constant 0 : index
      %c0_21 = arith.constant 0 : index
      %27 = vector.load %arg7[%c0_20, %c0_21] : memref<16x128xf32, #tpu.memory_space<vmem>>, vector<16x128xf32>
      %c0_22 = arith.constant 0 : index
      %c0_23 = arith.constant 0 : index
      %28 = vector.load %arg6[%c0_22, %c0_23] : memref<16x128xf32, #tpu.memory_space<vmem>>, vector<16x128xf32>
      tpu.vector_store %arg6[%c0_22, %c0_23], %27 {strides = array<i32>} : memref<16x128xf32, #tpu.memory_space<vmem>>, vector<16x128xf32>,
    } else {
    }
    return
  }
  func.func @transform_0(%arg0: i32, %arg1: i32) -> (i32, i32) {
    %c0_i32 = arith.constant 0 : i32
    %c0_i32_0 = arith.constant 0 : i32
    return %arg0, %c0_i32 : i32, i32
  }
  func.func @transform_1(%arg0: i32, %arg1: i32) -> (i32, i32, i32) {
    %c0_i32 = arith.constant 0 : i32
    %c0_i32_0 = arith.constant 0 : i32
    %c0_i32_1 = arith.constant 0 : i32
    return %arg1, %c0_i32, %c0_i32_0 : i32, i32, i32
  }
  func.func @transform_2(%arg0: i32, %arg1: i32) -> (i32, i32, i32) {
    %c0_i32 = arith.constant 0 : i32
    %c0_i32_0 = arith.constant 0 : i32
    %c0_i32_1 = arith.constant 0 : i32
    return %arg1, %c0_i32, %c0_i32_0 : i32, i32, i32
  }
  func.func @transform_3(%arg0: i32, %arg1: i32) -> (i32, i32, i32) {
    %c0_i32 = arith.constant 0 : i32
    %c0_i32_0 = arith.constant 0 : i32
    %c0_i32_1 = arith.constant 0 : i32
    return %arg1, %c0_i32, %c0_i32_0 : i32, i32, i32
  }
  func.func @transform_4(%arg0: i32, %arg1: i32) -> (i32, i32) {
    %c0_i32 = arith.constant 0 : i32
    %c0_i32_0 = arith.constant 0 : i32
    return %arg0, %c0_i32 : i32, i32
  }
}

</mosaic_0001>

<bundles_post_ra>
// kernel: tpu_custom_call.1
= control target key start
LH: loop header
LB: loop body
LE: loop exit
PB: predicated region body
PF: predicated region fallthrough
CT: control target
= control target key end

     0   :  { %9 = vsyncpa [#allocation4], 0  ;;  %s1002_s0 = inlined_call_operand.hbm [shape: bf16[16,128], index: 0, kind: input, shape index: {}]   ;;  %s1003_s1 = inlined_call_operand.hbm [shape: bf16[1,128,256], index: 1, kind: input, shape index: {}]   ;;  %s1004_s2 = inlined_call_operand.hbm [shape: bf16[1,128,256], index: 2, kind: input, shape index: {}]   ;;  %s1005_s3 = inlined_call_operand.hbm [shape: bf16[1,256,128], index: 3, kind: input, shape index: {}]   ;;  %s1006_s4 = inlined_call_operand.hbm [shape: f32[16,128], index: 4, kind: output, shape index: {}]  }
   0x1   :  { %10 = vsyncpa [#allocation7], 0 }
   0x2   :  { %11 = vsyncpa [#allocation10], 0 }
   0x3   :  { %12 = vsyncpa [#allocation5], 0  ;;  %s885_s15 = smov [#allocation6]   ;;  %s767_s19 = scalar_lea.hbm %s1003_s1, 2048 }
   0x4   :  { %s30_s16 = sshll.u32 %s885_s15, 4  ;;  %p768_p0 = scmp.ne.s32.totalorder %s1003_s1, %s767_s19  ;;  %s31_s16 = int_to_ptr.vmem [resolvable:$true] %s30_s16 }
   0x5   :  { %p771_p1 = scmp.lt.u32.totalorder %s767_s19, %s1003_s1 }
   0x7   :  { %p773_p2 = pnand %p771_p1, %p768_p0 }
   0x9   :  { %776 = shalt.err (!%p773_p2)
}
   0xa   :  { %s777_s24 = scalar_lea.vmem %s31_s16, 2048  ;;  %p782_p4 = scmp.lt.s32.totalorder %s31_s16, %s31_s16 }
   0xb   :  { %p778_p3 = scmp.ne.s32.totalorder %s31_s16, %s777_s24  ;;  %p783_p5 = scmp.lt.s32.totalorder %s777_s24, %s777_s24 }
   0xd   :  { %p784_p6 = por %p783_p5, %p782_p4 }
   0xf   :  { %p785_p7 = pnand %p784_p6, %p778_p3 }
  0x11   :  { %788 = shalt.err (!%p785_p7)
}
  0x12   :  { %s886_s25 = smov 128   ;;  %s887_s26 = smov 8  }
  0x13   :  { %36 = dma.hbm_to_vmem [thread:$0]  %s1003_s1, 2048, %s31_s16, [#allocation7], %s886_s25, %s886_s25, %s887_s26  }
  0x14   :  { %s888_s29 = smov [#allocation3]   ;;  %s789_s7 = scalar_lea.hbm %s1002_s0, 128 }
  0x15   :  { %s18_s30 = sshll.u32 %s888_s29, 4  ;;  %p790_p8 = scmp.ne.s32.totalorder %s1002_s0, %s789_s7  ;;  %s19_s30 = int_to_ptr.vmem [resolvable:$true] %s18_s30 }
  0x16   :  { %p793_p9 = scmp.lt.u32.totalorder %s789_s7, %s1002_s0 }
  0x18   :  { %p795_p10 = pnand %p793_p9, %p790_p8 }
  0x1a   :  { %798 = shalt.err (!%p795_p10)
}
  0x1b   :  { %s799_s12 = scalar_lea.vmem %s19_s30, 128  ;;  %p804_p12 = scmp.lt.s32.totalorder %s19_s30, %s19_s30 }
  0x1c   :  { %p800_p11 = scmp.ne.s32.totalorder %s19_s30, %s799_s12  ;;  %p805_p13 = scmp.lt.s32.totalorder %s799_s12, %s799_s12 }
  0x1e   :  { %p806_p0 = por %p805_p13, %p804_p12 }
  0x20   :  { %p807_p1 = pnand %p806_p0, %p800_p11 }
  0x22   :  { %810 = shalt.err (!%p807_p1)
}
  0x23   :  { %s889_s1 = smov 64   ;;  %s890_s13 = smov 4  }
  0x24   :  { %24 = dma.hbm_to_vmem [thread:$0]  %s1002_s0, 128, %s19_s30, [#allocation4], %s889_s1, %s889_s1, %s890_s13  }
  0x25   :  { %s891_s16 = smov [#allocation8]   ;;  %s892_s18 = smov [#allocation9]  }
  0x26   :  { %s42_s17 = sshll.u32 %s891_s16, 4  ;;  %s54_s19 = sshll.u32 %s892_s18, 4  ;;  %s43_s17 = int_to_ptr.vmem [resolvable:$true] %s42_s17  ;;  %s950_s19 = int_to_ptr.vmem [resolvable:$true] %s54_s19 }
  0x27   :  { %s811_s22 = scalar_lea.hbm %s1004_s2, 2048 }
  0x28   :  { %p812_p2 = scmp.ne.s32.totalorder %s1004_s2, %s811_s22  ;;  %p815_p3 = scmp.lt.u32.totalorder %s811_s22, %s1004_s2 }
  0x2a   :  { %p817_p4 = pnand %p815_p3, %p812_p2 }
  0x2c   :  { %820 = shalt.err (!%p817_p4)
}
  0x2d   :  { %s821_s0 = scalar_lea.vmem %s43_s17, 2048  ;;  %p826_p6 = scmp.lt.s32.totalorder %s43_s17, %s43_s17 }
  0x2e   :  { %p822_p5 = scmp.ne.s32.totalorder %s43_s17, %s821_s0  ;;  %p827_p7 = scmp.lt.s32.totalorder %s821_s0, %s821_s0 }
  0x30   :  { %p828_p8 = por %p827_p7, %p826_p6 }
  0x32   :  { %p829_p9 = pnand %p828_p8, %p822_p5 }
  0x34   :  { %832 = shalt.err (!%p829_p9)
}
  0x35   :  { %48 = dma.hbm_to_vmem [thread:$0]  %s1004_s2, 2048, %s43_s17, [#allocation7], %s886_s25, %s886_s25, %s887_s26  }
  0x36   :  { %s833_s7 = scalar_lea.hbm %s1005_s3, 2048 }
  0x37   :  { %p834_p10 = scmp.ne.s32.totalorder %s1005_s3, %s833_s7  ;;  %p837_p11 = scmp.lt.u32.totalorder %s833_s7, %s1005_s3 }
  0x39   :  { %p839_p12 = pnand %p837_p11, %p834_p10 }
  0x3b   :  { %842 = shalt.err (!%p839_p12)
}
  0x3c   :  { %s843_s12 = scalar_lea.vmem %s950_s19, 2048  ;;  %p848_p0 = scmp.lt.s32.totalorder %s950_s19, %s950_s19 }
  0x3d   :  { %p844_p13 = scmp.ne.s32.totalorder %s950_s19, %s843_s12  ;;  %p849_p1 = scmp.lt.s32.totalorder %s843_s12, %s843_s12 }
  0x3f   :  { %p850_p2 = por %p849_p1, %p848_p0 }
  0x41   :  { %p851_p3 = pnand %p850_p2, %p844_p13 }
  0x43   :  { %854 = shalt.err (!%p851_p3)
}
  0x44   :  { %60 = dma.hbm_to_vmem [thread:$0]  %s1005_s3, 2048, %s950_s19, [#allocation10], %s889_s1, %s889_s1, %s890_s13  }
  0x45   :  { %877 = dma.done.wait [#allocation4], 128  }
  0x46   :  { %878 = vsyncadd [#allocation4], 4294967168 }
  0x47   :  { %879 = dma.done.wait [#allocation7], 4096  }
  0x48   :  { %880 = vsyncadd [#allocation7], 4294963200 }
  0x49   :  { %881 = dma.done.wait [#allocation10], 2048  }
  0x4a   :  { %882 = vsyncadd [#allocation10], 4294965248  ;;  %v893_v0 = vmov 0   ;;  %v686_v1 = vld [vmem:[#allocation6 + $0x4] ss:$8 sps:$4 sm:$0xff]   ;;  %v716_v29 = vld [vmem:[#allocation3] sm:$0xff]  }
  0x4b   :  { %216 = vmatprep.mubr.bf16.mxu0 %v893_v0  ;;  %355 = vmatprep.mubr.bf16.mxu1 %v893_v0  ;;  %v688_v2 = vld [vmem:[#allocation6] ss:$8 sps:$4 sm:$0xff]   ;;  %v689_v3 = vld [vmem:[#allocation6 + $0x14] ss:$8 sps:$4 sm:$0xff]   ;;  %v691_v4 = vld [vmem:[#allocation6 + $0x10] ss:$8 sps:$4 sm:$0xff]  }
  0x4c   :  { %184 = vmatprep.subr.bf16.mxu0 %v686_v1  ;;  %v692_v5 = vld [vmem:[#allocation6 + $0x24] ss:$8 sps:$4 sm:$0xff]   ;;  %v694_v6 = vld [vmem:[#allocation6 + $0x20] ss:$8 sps:$4 sm:$0xff]   ;;  %v695_v7 = vld [vmem:[#allocation6 + $0x34] ss:$8 sps:$4 sm:$0xff]  }
  0x4d   :  { %185 = vmatpush1.bf16.msra.mxu0 %v688_v2  ;;  %v707_v8 = vld [vmem:[#allocation8 + $0x4] ss:$8 sps:$4 sm:$0xff]   ;;  %v709_v9 = vld [vmem:[#allocation8] ss:$8 sps:$4 sm:$0xff]   ;;  %v697_v10 = vld [vmem:[#allocation6 + $0x30] ss:$8 sps:$4 sm:$0xff]  }
  0x4e   :  { %186 = vmatprep.subr.bf16.mxu0 %v689_v3  ;;  %v698_v11 = vld [vmem:[#allocation6 + $0x44] ss:$8 sps:$4 sm:$0xff]   ;;  %323 = vmatprep.subr.bf16.mxu1 %v707_v8  ;;  %v713_v12 = vld [vmem:[#allocation8 + $0x14] ss:$8 sps:$4 sm:$0xff]   ;;  %v715_v13 = vld [vmem:[#allocation8 + $0x10] ss:$8 sps:$4 sm:$0xff]  }
  0x4f   :  { %324 = vmatpush1.bf16.msra.mxu1 %v709_v9  ;;  %v700_v14 = vld [vmem:[#allocation6 + $0x40] ss:$8 sps:$4 sm:$0xff]   ;;  %v717_v15 = vld [vmem:[#allocation8 + $0x24] ss:$8 sps:$4 sm:$0xff]   ;;  %v701_v16 = vld [vmem:[#allocation6 + $0x54] ss:$8 sps:$4 sm:$0xff]  }
  0x50   :  { %325 = vmatprep.subr.bf16.mxu1 %v713_v12  ;;  %v719_v17 = vld [vmem:[#allocation8 + $0x20] ss:$8 sps:$4 sm:$0xff]   ;;  %v720_v18 = vld [vmem:[#allocation8 + $0x34] ss:$8 sps:$4 sm:$0xff]   ;;  %v703_v19 = vld [vmem:[#allocation6 + $0x50] ss:$8 sps:$4 sm:$0xff]  }
  0x51   :  { %187 = vmatpush1.bf16.msra.mxu0 %v691_v4  ;;  %v704_v20 = vld [vmem:[#allocation6 + $0x64] ss:$8 sps:$4 sm:$0xff]   ;;  %v706_v21 = vld [vmem:[#allocation6 + $0x60] ss:$8 sps:$4 sm:$0xff]   ;;  %v722_v22 = vld [vmem:[#allocation8 + $0x30] ss:$8 sps:$4 sm:$0xff]  }
  0x52   :  { %188 = vmatprep.subr.bf16.mxu0 %v692_v5  ;;  %v710_v23 = vld [vmem:[#allocation6 + $0x74] ss:$8 sps:$4 sm:$0xff]   ;;  %v723_v24 = vld [vmem:[#allocation8 + $0x44] ss:$8 sps:$4 sm:$0xff]   ;;  %v725_v25 = vld [vmem:[#allocation8 + $0x40] ss:$8 sps:$4 sm:$0xff]  }
  0x53   :  { %326 = vmatpush1.bf16.msra.mxu1 %v715_v13  ;;  %v726_v26 = vld [vmem:[#allocation8 + $0x54] ss:$8 sps:$4 sm:$0xff]   ;;  %v712_v27 = vld [vmem:[#allocation6 + $0x70] ss:$8 sps:$4 sm:$0xff]   ;;  %v729_v30 = vld [vmem:[#allocation8 + $0x64] ss:$8 sps:$4 sm:$0xff]  }
  0x54   :  { %327 = vmatprep.subr.bf16.mxu1 %v717_v15  ;;  %v728_v28 = vld [vmem:[#allocation8 + $0x50] ss:$8 sps:$4 sm:$0xff]   ;;  %v731_v31 = vld [vmem:[#allocation8 + $0x60] ss:$8 sps:$4 sm:$0xff]   ;;  %v732_v32 = vld [vmem:[#allocation8 + $0x74] ss:$8 sps:$4 sm:$0xff]  }
  0x55   :  { %189 = vmatpush1.bf16.msra.mxu0 %v694_v6  ;;  %v734_v33 = vld [vmem:[#allocation8 + $0x70] ss:$8 sps:$4 sm:$0xff]   ;;  %v735_v34 = vld [vmem:[#allocation9 + $0x40] sm:$0xff]   ;;  %v737_v36 = vld [vmem:[#allocation9 + $0x48] sm:$0xff]   ;;  %s894_s3 = smov [#allocation11]  }
  0x56   :  { %190 = vmatprep.subr.bf16.mxu0 %v695_v7  ;;  %v736_v35 = vld [vmem:[#allocation9] sm:$0xff]   ;;  %v738_v37 = vld [vmem:[#allocation9 + $0x8] sm:$0xff]   ;;  %v739_v38 = vld [vmem:[#allocation9 + $0x50] sm:$0xff]   ;;  %s587_s1 = sshll.u32 %s894_s3, 4  ;;  %s588_s1 = int_to_ptr.vmem [resolvable:$true] %s587_s1 }
  0x57   :  { %328 = vmatpush1.bf16.msra.mxu1 %v719_v17  ;;  %v740_v39 = vld [vmem:[#allocation9 + $0x10] sm:$0xff]   ;;  %v741_v40 = vld [vmem:[#allocation9 + $0x58] sm:$0xff]   ;;  %v743_v42 = vld [vmem:[#allocation9 + $0x60] sm:$0xff]   ;;  %s855_s13 = scalar_lea.vmem %s588_s1, 256  ;;  %p860_p5 = scmp.lt.s32.totalorder %s588_s1, %s588_s1 }
  0x58   :  { %329 = vmatprep.subr.bf16.mxu1 %v720_v18  ;;  %v742_v41 = vld [vmem:[#allocation9 + $0x18] sm:$0xff]   ;;  %v744_v43 = vld [vmem:[#allocation9 + $0x20] sm:$0xff]   ;;  %v745_v44 = vld [vmem:[#allocation9 + $0x68] sm:$0xff]   ;;  %p856_p4 = scmp.ne.s32.totalorder %s588_s1, %s855_s13  ;;  %p861_p6 = scmp.lt.s32.totalorder %s855_s13, %s855_s13 }
  0x59   :  { %191 = vmatpush1.bf16.msra.mxu0 %v697_v10  ;;  %v746_v45 = vld [vmem:[#allocation9 + $0x28] sm:$0xff]   ;;  %v747_v46 = vld [vmem:[#allocation9 + $0x70] sm:$0xff]   ;;  %v749_v48 = vld [vmem:[#allocation9 + $0x78] sm:$0xff]  }
  0x5a   :  { %192 = vmatprep.subr.bf16.mxu0 %v698_v11  ;;  %v748_v47 = vld [vmem:[#allocation9 + $0x30] sm:$0xff]   ;;  %v750_v49 = vld [vmem:[#allocation9 + $0x38] sm:$0xff]   ;;  %p862_p7 = por %p861_p6, %p860_p5 }
  0x5b   :  { %330 = vmatpush1.bf16.msra.mxu1 %v722_v22 }
  0x5c   :  { %331 = vmatprep.subr.bf16.mxu1 %v723_v24  ;;  %p863_p8 = pnand %p862_p7, %p856_p4 }
  0x5d   :  { %193 = vmatpush1.bf16.msra.mxu0 %v700_v14 }
  0x5e   :  { %194 = vmatprep.subr.bf16.mxu0 %v701_v16 }
  0x5f   :  { %332 = vmatpush1.bf16.msra.mxu1 %v725_v25 }
  0x60   :  { %333 = vmatprep.subr.bf16.mxu1 %v726_v26 }
  0x61   :  { %195 = vmatpush1.bf16.msra.mxu0 %v703_v19 }
  0x62   :  { %196 = vmatprep.subr.bf16.mxu0 %v704_v20 }
  0x63   :  { %334 = vmatpush1.bf16.msra.mxu1 %v728_v28 }
  0x64   :  { %335 = vmatprep.subr.bf16.mxu1 %v729_v30 }
  0x65   :  { %197 = vmatpush1.bf16.msra.mxu0 %v706_v21 }
  0x66   :  { %198 = vmatprep.subr.bf16.mxu0 %v710_v23 }
  0x67   :  { %336 = vmatpush1.bf16.msra.mxu1 %v731_v31 }
  0x68   :  { %337 = vmatprep.subr.bf16.mxu1 %v732_v32 }
  0x69   :  { %199 = vmatpush1.bf16.msra.mxu0 %v712_v27 }
  0x6a   :  { %654 = vmatprep.subr.bf16.mxu0 %v735_v34 }
  0x6b   :  { %338 = vmatpush1.bf16.msra.mxu1 %v734_v33 }
  0x6c   :  { %217 = vmatmul.mubr.bf16.vlgmr.msra.gmra.mrb[0].mxu0 %v716_v29 }
  0x6d   :  { %655 = vmatpush3.bf16.msra.mxu0 %v736_v35 }
  0x6e   :  { %356 = vmatmul.mubr.bf16.vlgmr.msra.gmra.mrb[0].mxu1 %v716_v29  ;;  %656 = vmatprep.subr.bf16.mxu0 %v737_v36 }
  0x71   :  { %657 = vmatpush3.bf16.msra.mxu0 %v738_v37 }
  0x72   :  { %658 = vmatprep.subr.bf16.mxu0 %v739_v38 }
  0x75   :  { %659 = vmatpush3.bf16.msra.mxu0 %v740_v39 }
  0x76   :  { %660 = vmatprep.subr.bf16.mxu0 %v741_v40 }
  0x79   :  { %661 = vmatpush3.bf16.msra.mxu0 %v742_v41 }
  0x7a   :  { %662 = vmatprep.subr.bf16.mxu0 %v743_v42 }
  0x7d   :  { %663 = vmatpush3.bf16.msra.mxu0 %v744_v43 }
  0x7e   :  { %664 = vmatprep.subr.bf16.mxu0 %v745_v44 }
  0x81   :  { %665 = vmatpush3.bf16.msra.mxu0 %v746_v45 }
  0x82   :  { %666 = vmatprep.subr.bf16.mxu0 %v747_v46 }
  0x85   :  { %667 = vmatpush3.bf16.msra.mxu0 %v748_v47 }
  0x86   :  { %668 = vmatprep.subr.bf16.mxu0 %v749_v48 }
  0x89   :  { %669 = vmatpush3.bf16.msra.mxu0 %v750_v49 }
 0x13f   :  { %v218_v50 = vpop.f32.mrb[0].mxu0 }
 0x140   :  { %v634_v51 = vmul.f32 -1.442695, %v218_v50  ;;  %v220_v52 = vpop.f32.mrb[1].mxu0 }
 0x141   :  { %v635_v53 = vmul.f32 -1.442695, %v220_v52  ;;  %v222_v54 = vpop.f32.mrb[2].mxu0  ;;  %v357_v58 = vpop.f32.mrb[0].mxu1 }
 0x142   :  { %751 = vpow2.f32 %v634_v51  ;;  %v636_v55 = vmul.f32 -1.442695, %v222_v54  ;;  %v224_v56 = vpop.f32.mrb[3].mxu0  ;;  %v359_v59 = vpop.f32.mrb[1].mxu1 }
 0x143   :  { %753 = vpow2.f32 %v635_v53  ;;  %v637_v57 = vmul.f32 -1.442695, %v224_v56  ;;  %v361_v60 = vpop.f32.mrb[2].mxu1 }
 0x144   :  { %755 = vpow2.f32 %v636_v55  ;;  %v363_v62 = vpop.f32.mrb[3].mxu1 }
 0x145   :  { %757 = vpow2.f32 %v637_v57 }
 0x14c   :  { %v752_v61 = vpop.eup %751 }
 0x14d   :  { %v754_v63 = vpop.eup %753  ;;  %v378_v0 = vadd.f32 1.0, %v752_v61 }
 0x14e   :  { %v756_v1 = vpop.eup %755  ;;  %v379_v2 = vadd.f32 1.0, %v754_v63 }
 0x14f   :  { %v758_v3 = vpop.eup %757  ;;  %759 = vrcp.f32 %v378_v0  ;;  %v380_v4 = vadd.f32 1.0, %v756_v1 }
 0x150   :  { %761 = vrcp.f32 %v379_v2  ;;  %v381_v5 = vadd.f32 1.0, %v758_v3 }
 0x151   :  { %763 = vrcp.f32 %v380_v4 }
 0x152   :  { %765 = vrcp.f32 %v381_v5 }
 0x159   :  { %v760_v6 = vpop.eup %759 }
 0x15a   :  { %v762_v7 = vpop.eup %761  ;;  %v390_v8 = vmul.f32 %v760_v6, %v218_v50 }
 0x15b   :  { %v764_v9 = vpop.eup %763  ;;  %v391_v10 = vmul.f32 %v762_v7, %v220_v52 }
 0x15c   :  { %v766_v11 = vpop.eup %765  ;;  %v392_v12 = vmul.f32 %v764_v9, %v222_v54  ;;  %v394_v13 = vmul.f32 %v390_v8, %v357_v58 }
 0x15d   :  { %v393_v14 = vmul.f32 %v766_v11, %v224_v56  ;;  %v395_v15 = vmul.f32 %v391_v10, %v359_v59 }
 0x15e   :  { %v396_v16 = vmul.f32 %v392_v12, %v361_v60 }
 0x15f   :  { %v397_v17 = vmul.f32 %v393_v14, %v363_v62 }
 0x160   :  { %v400_v18 = vpack.c.bf16 %v396_v16, %v394_v13 }
 0x161   :  { %v401_v19 = vpack.c.bf16 %v397_v17, %v395_v15 }
 0x163   :  { %562 = vmatprep.mubr.bf16.mxu0 %v401_v19 }
 0x164   :  { %563 = vmatmul.mubr.bf16.vlgmr.msra.gmra.mrb[4].mxu0 %v400_v18 }
 0x237   :  { %v670_v20 = vpop.f32.mrb[4].mxu0 }
 0x238   :  { %v671_v21 = vpop.f32.mrb[5].mxu0 }
 0x239   :  { %v672_v22 = vadd.f32 %v671_v21, %v670_v20  ;;  %v673_v23 = vpop.f32.mrb[6].mxu0 }
 0x23a   :  { %v674_v24 = vpop.f32.mrb[7].mxu0 }
 0x23b   :  { %580 = vst [vmem:[#allocation11] sm:$0xff] %v672_v22  ;;  %v675_v25 = vadd.f32 %v674_v24, %v673_v23 }
 0x23d   :  { %581 = vst [vmem:[#allocation11 + $0x8] sm:$0xff] %v675_v25 }
 0x23e   :  { %866 = shalt.err (!%p863_p8)
}
 0x23f   :  { %s867_s17 = scalar_lea.hbm %s1006_s4, 256 }
 0x240   :  { %p868_p9 = scmp.ne.s32.totalorder %s1006_s4, %s867_s17  ;;  %p871_p10 = scmp.lt.u32.totalorder %s867_s17, %s1006_s4 }
 0x242   :  { %p873_p11 = pnand %p871_p10, %p868_p9 }
 0x244   :  { %876 = shalt.err (!%p873_p11)
}
 0x245   :  { %593 = dma.vmem_to_hbm [thread:$0]  %s588_s1, 256, %s1006_s4, [#allocation5], %s886_s25, %s886_s25, %s887_s26  }
 0x246   :  { %883 = dma.done.wait [#allocation5], 256  }
 0x247   :  { %884 = vsyncadd [#allocation5], 4294967040 }
 0x248   :  { %597 = vsyncpa [#allocation4], 1 }
 0x249   :  { %598 = vsyncpa [#allocation7], 1 }
 0x24a   :  { %599 = vsyncpa [#allocation10], 1 }
 0x24b   :  { %600 = vsyncpa [#allocation5], 1 }

</bundles_post_ra>
